<compile_context>
chip_gen: v5e
topology: v5e:2x2
jax: 0.10.0
libtpu: 0.0.40
codegen_flags: <defaults>
</compile_context>

<pallas_src>
import functools

import jax
import jax.numpy as jnp
from jax.experimental import pallas as pl
from jax.experimental.pallas import tpu as pltpu


def _round_up(n, m):
    return ((n + m - 1) // m) * m


# Row-tile cap (tunable).  1024 f32 rows x 128 lanes = 512 KiB per buffer:
# far inside every generation's scoped-VMEM default, and large enough that the
# ~0.35 us per-grid-step overhead is amortised.
_TB_CAP = 1024
# Below this many padded rows, one grid step is cheaper than splitting; above
# it we force an even number of steps so both v7x TensorCores get work.
_MIN_ROWS_FOR_SPLIT = 1024


def _choose_row_tiling(batch_pad):
    """Return (row_tile, padded_batch) with padded_batch % row_tile == 0."""
    if batch_pad < _MIN_ROWS_FOR_SPLIT and batch_pad <= _TB_CAP:
        return batch_pad, batch_pad
    n_steps = max(2, -(-batch_pad // _TB_CAP))
    if n_steps % 2:
        n_steps += 1                    # even #steps -> both v7x TCs busy
    tb = _round_up(-(-batch_pad // n_steps), 8)
    return tb, _round_up(batch_pad, tb)


# ----------------------------- Pallas kernel ------------------------------ #

def _fused_mlp_kernel(*refs, n_layers, activation, has_bias):
    """refs = (x_ref, <per-layer weight [+ bias if nonzero] refs...>, o_ref).

    Weights are pre-transposed to (in_pad, out_pad): y = x @ W + b, no
    in-kernel transpose.  All intermediate activations live in VMEM/vregs;
    only the final layer's output is stored to HBM.
    """
    x = refs[0][...]
    o_ref = refs[-1]
    params = refs[1:-1]

    p = 0
    for l in range(n_layers):
        w = params[p][...]
        p += 1
        # Optional bf16 weights: cast LHS only for the MXU, accumulate in f32.
        lhs = x if w.dtype == x.dtype else x.astype(w.dtype)
        y = jnp.dot(lhs, w, preferred_element_type=jnp.float32)
        if has_bias[l]:
            y = y + params[p][...]        # (1, out_pad) broadcast add
            p += 1
        if l < n_layers - 1:
            if activation == "tanh":
                y = jnp.tanh(y)           # EUP slot
            else:
                y = jnp.maximum(y, 0.0)   # VPU
        x = y
    o_ref[...] = x.astype(o_ref.dtype)


_SINGLE_BUFFER_WEIGHTS = None   # probed lazily on the first call


def _mlp_pallas_call(x_pad, flat_params, *, tb, out_pad, n_layers, activation,
                     has_bias, single_buffer):
    batch_pad, in_p = x_pad.shape

    def _resident(shape):
        # Constant-index blocks never change across the grid; single-buffer
        # them so the pipeline doesn't allocate a useless second copy.
        if single_buffer:
            return pl.BlockSpec(shape, lambda i: (0, 0),
                                pipeline_mode=pl.Buffered(1))
        return pl.BlockSpec(shape, lambda i: (0, 0))

    in_specs = [pl.BlockSpec((tb, in_p), lambda i: (i, 0))]
    in_specs += [_resident(p.shape) for p in flat_params]

    kernel = functools.partial(_fused_mlp_kernel, n_layers=n_layers,
                               activation=activation, has_bias=has_bias)
    return pl.pallas_call(
        kernel,
        out_shape=jax.ShapeDtypeStruct((batch_pad, out_pad), jnp.float32),
        grid=(batch_pad // tb,),
        in_specs=in_specs,
        out_specs=pl.BlockSpec((tb, out_pad), lambda i: (i, 0)),
        compiler_params=pltpu.CompilerParams(
            dimension_semantics=("parallel",)),
    )(x_pad, *flat_params)


def fused_mlp_forward(x, padded_params, has_bias, *, activation, output_size):
    """Run the whole MLP as one pallas_call.  x: (batch, input_size)."""
    global _SINGLE_BUFFER_WEIGHTS

    batch, in_dim = x.shape
    in_p = padded_params[0][0].shape[0]          # layer-0 contraction pad (x8)
    out_pad = padded_params[-1][0].shape[1]      # final lane-dense slab width
    n_layers = len(padded_params)

    batch_pad = _round_up(max(batch, 1), 8)
    tb, batch_pad = _choose_row_tiling(batch_pad)

    x = x.astype(jnp.float32)
    if batch_pad != batch or in_p != in_dim:
        x = jnp.pad(x, ((0, batch_pad - batch), (0, in_p - in_dim)))

    flat = []
    for l, (wt, b) in enumerate(padded_params):
        flat.append(wt)
        if has_bias[l]:                          # zero biases never shipped
            flat.append(b)

    tries = ([True, False] if _SINGLE_BUFFER_WEIGHTS is None
             else [_SINGLE_BUFFER_WEIGHTS])
    out_arr = None
    last_err = None
    for sb in tries:
        try:
            out_arr = _mlp_pallas_call(
                x, flat, tb=tb, out_pad=out_pad, n_layers=n_layers,
                activation=activation, has_bias=has_bias, single_buffer=sb)
            if len(tries) > 1:                   # probing: surface errors now
                out_arr = jax.block_until_ready(out_arr)
            _SINGLE_BUFFER_WEIGHTS = sb
            last_err = None
            break
        except Exception as err:                 # pl.Buffered(1) unsupported
            last_err = err
            out_arr = None
    if last_err is not None:
        raise last_err

    # TODO(synk): in a real ODE integration loop, keep x and the (., out_pad)
    # output slab in padded layout across steps (or vmap many states into one
    # call) instead of re-padding / slicing every call.
    return out_arr[:batch, :output_size]


# ------------------------------ MLP wrapper ------------------------------- #

class MLP:
    """JAX/Pallas equivalent of the PyTorch MLP module (Lotka-Volterra ODEs)."""

    def __init__(self, input_size, output_size, nlayers, hidden_size,
                 activation=None, initialisation=None, key=None,
                 weight_dtype=jnp.float32):
        if key is None:
            key = jax.random.PRNGKey(0)
        self.activation = "tanh" if activation == "tanh" else "relu"
        self.output_size = output_size
        self.params = []   # PyTorch-style: (W (out,in), b (1,out)) — reference

        # First layer: PyTorch default init (uniform +/- 1/sqrt(fan_in)).
        key, kw, kb = jax.random.split(key, 3)
        bound = 1.0 / jnp.sqrt(jnp.float32(input_size))
        w0 = jax.random.uniform(kw, (hidden_size, input_size), jnp.float32,
                                -bound, bound)
        b0 = jax.random.uniform(kb, (1, hidden_size), jnp.float32,
                                -bound, bound)
        self.params.append((w0, b0))

        # Hidden layers: normal(std=0.01) weights, zero bias.
        if nlayers > 2:
            for _ in range(1, nlayers - 1):
                key, kw = jax.random.split(key)
                w = 0.01 * jax.random.normal(kw, (hidden_size, hidden_size),
                                             jnp.float32)
                b = jnp.zeros((1, hidden_size), jnp.float32)
                self.params.append((w, b))

        # Output layer.
        if initialisation == "zeros":
            w_last = jnp.zeros((output_size, hidden_size), jnp.float32)
        else:
            key, kw = jax.random.split(key)
            w_last = 0.01 * jax.random.normal(kw, (output_size, hidden_size),
                                              jnp.float32)
        b_last = jnp.zeros((1, output_size), jnp.float32)
        self.params.append((w_last, b_last))

        # Pre-transpose + zero-pad once.  Layer 0's contraction dim only pads
        # to a multiple of 8 (matches the cheap x padding); deeper layers pad
        # to 128 to match the lane-padded activations.  Output dims pad to a
        # lane-dense multiple of 128.  weight_dtype=jnp.bfloat16 is the v6e/v7x
        # option (biases/activations/accumulation stay f32).
        self._padded = []
        has_bias = []
        for l, (w, b) in enumerate(self.params):
            out_f, in_f = w.shape
            in_p = _round_up(in_f, 8) if l == 0 else _round_up(in_f, 128)
            out_p = _round_up(out_f, 128)
            wt = jnp.pad(w.T, ((0, in_p - in_f), (0, out_p - out_f)))
            bp = jnp.pad(b, ((0, 0), (0, out_p - out_f)))
            self._padded.append((wt.astype(weight_dtype), bp))
            has_bias.append(bool(jnp.any(b != 0.0)))
        self._has_bias = tuple(has_bias)

    def __call__(self, x):
        return fused_mlp_forward(x, self._padded, self._has_bias,
                                 activation=self.activation,
                                 output_size=self.output_size)


# Pure-JAX reference for a sanity check.
def _reference_forward(params, x, activation):
    act = jnp.tanh if activation == "tanh" else (lambda v: jnp.maximum(v, 0.0))
    for (w, b) in params[:-1]:
        x = act(x @ w.T + b)
    w, b = params[-1]
    return x @ w.T + b


# --------------------------------- main ----------------------------------- #

if __name__ == "__main__":
    key = jax.random.PRNGKey(0)
    k_in, k_mlp = jax.random.split(key)

    batch = 8
    input_size = 2     # Lotka-Volterra state dimension (prey, predator)
    output_size = 2
    hidden_size = 32
    nlayers = 3

    x = jax.random.normal(k_in, (batch, input_size), jnp.float32)

    mlp = MLP(input_size=input_size, output_size=output_size, nlayers=nlayers,
              hidden_size=hidden_size, activation="tanh",
              initialisation=None, key=k_mlp)

    out = jax.block_until_ready(mlp(x))
    ref = _reference_forward(mlp.params, x, mlp.activation)

    assert out.shape == (batch, output_size)
    assert jnp.allclose(out, ref, atol=1e-5, rtol=1e-5), (
        float(jnp.max(jnp.abs(out - ref))))

    print("KERNEL_OK")
</pallas_src>

<mosaic_0001>
module attributes {stable_mosaic.version = 11 : i64} {
  func.func @_fused_mlp_kernel(%arg0: i32, %arg1: memref<8x8xf32, #tpu.memory_space<vmem>>, %arg2: memref<8x128xf32, #tpu.memory_space<vmem>>, %arg3: memref<1x128xf32, #tpu.memory_space<vmem>>, %arg4: memref<128x128xf32, #tpu.memory_space<vmem>>, %arg5: memref<128x128xf32, #tpu.memory_space<vmem>>, %arg6: memref<8x128xf32, #tpu.memory_space<vmem>>) attributes {dimension_semantics = [#tpu.dimension_semantics<parallel>], iteration_bounds = array<i64: 1>, scalar_prefetch = 0 : i64, scratch_operands = 0 : i64, tpu.core_type = #tpu.core_type<tc>, window_params = [{transform_indices = @transform_0, window_bounds = array<i64: 8, 8>}, {pipeline_mode = #tpu.pipeline_mode<synchronous>, transform_indices = @transform_1, window_bounds = array<i64: 8, 128>}, {pipeline_mode = #tpu.pipeline_mode<synchronous>, transform_indices = @transform_2, window_bounds = array<i64: 1, 128>}, {pipeline_mode = #tpu.pipeline_mode<synchronous>, transform_indices = @transform_3, window_bounds = array<i64: 128, 128>}, {pipeline_mode = #tpu.pipeline_mode<synchronous>, transform_indices = @transform_4, window_bounds = array<i64: 128, 128>}, {transform_indices = @transform_5, window_bounds = array<i64: 8, 128>}]} {
    %c0 = arith.constant 0 : index
    %c0_0 = arith.constant 0 : index
    %0 = vector.load %arg1[%c0, %c0_0] : memref<8x8xf32, #tpu.memory_space<vmem>>, vector<8x8xf32>
    %c0_1 = arith.constant 0 : index
    %c0_2 = arith.constant 0 : index
    %1 = vector.load %arg2[%c0_1, %c0_2] : memref<8x128xf32, #tpu.memory_space<vmem>>, vector<8x128xf32>
    %cst = arith.constant dense<0.000000e+00> : vector<8x128xf32>
    %2 = tpu.matmul %0, %1, %cst {dimension_numbers = #tpu.dot_dimension_numbers<[1], [0], [0], [1], [0, 0, 1, 1], [], []>} : vector<8x8xf32>, vector<8x128xf32>, vector<8x128xf32> -> vector<8x128xf32>
    %c0_3 = arith.constant 0 : index
    %c0_4 = arith.constant 0 : index
    %3 = vector.load %arg3[%c0_3, %c0_4] : memref<1x128xf32, #tpu.memory_space<vmem>>, vector<1x128xf32>
    %4 = vector.broadcast %3 : vector<1x128xf32> to vector<8x128xf32>
    %5 = arith.addf %2, %4 : vector<8x128xf32>
    %6 = math.tanh %5 : vector<8x128xf32>
    %c0_5 = arith.constant 0 : index
    %c0_6 = arith.constant 0 : index
    %7 = vector.load %arg4[%c0_5, %c0_6] : memref<128x128xf32, #tpu.memory_space<vmem>>, vector<128x128xf32>
    %cst_7 = arith.constant dense<0.000000e+00> : vector<8x128xf32>
    %8 = tpu.matmul %6, %7, %cst_7 {dimension_numbers = #tpu.dot_dimension_numbers<[1], [0], [0], [1], [0, 0, 1, 1], [], []>} : vector<8x128xf32>, vector<128x128xf32>, vector<8x128xf32> -> vector<8x128xf32>
    %9 = math.tanh %8 : vector<8x128xf32>
    %c0_8 = arith.constant 0 : index
    %c0_9 = arith.constant 0 : index
    %10 = vector.load %arg5[%c0_8, %c0_9] : memref<128x128xf32, #tpu.memory_space<vmem>>, vector<128x128xf32>
    %cst_10 = arith.constant dense<0.000000e+00> : vector<8x128xf32>
    %11 = tpu.matmul %9, %10, %cst_10 {dimension_numbers = #tpu.dot_dimension_numbers<[1], [0], [0], [1], [0, 0, 1, 1], [], []>} : vector<8x128xf32>, vector<128x128xf32>, vector<8x128xf32> -> vector<8x128xf32>
    %c0_11 = arith.constant 0 : index
    %c0_12 = arith.constant 0 : index
    %12 = vector.load %arg6[%c0_11, %c0_12] : memref<8x128xf32, #tpu.memory_space<vmem>>, vector<8x128xf32>
    tpu.vector_store %arg6[%c0_11, %c0_12], %11 {strides = array<i32>} : memref<8x128xf32, #tpu.memory_space<vmem>>, vector<8x128xf32>,
    return
  }
  func.func @transform_0(%arg0: i32) -> (i32, i32) {
    %c0_i32 = arith.constant 0 : i32
    %c0_i32_0 = arith.constant 0 : i32
    return %arg0, %c0_i32 : i32, i32
  }
  func.func @transform_1(%arg0: i32) -> (i32, i32) {
    %c0_i32 = arith.constant 0 : i32
    %c0_i32_0 = arith.constant 0 : i32
    %c0_i32_1 = arith.constant 0 : i32
    return %c0_i32, %c0_i32_0 : i32, i32
  }
  func.func @transform_2(%arg0: i32) -> (i32, i32) {
    %c0_i32 = arith.constant 0 : i32
    %c0_i32_0 = arith.constant 0 : i32
    %c0_i32_1 = arith.constant 0 : i32
    return %c0_i32, %c0_i32_0 : i32, i32
  }
  func.func @transform_3(%arg0: i32) -> (i32, i32) {
    %c0_i32 = arith.constant 0 : i32
    %c0_i32_0 = arith.constant 0 : i32
    %c0_i32_1 = arith.constant 0 : i32
    return %c0_i32, %c0_i32_0 : i32, i32
  }
  func.func @transform_4(%arg0: i32) -> (i32, i32) {
    %c0_i32 = arith.constant 0 : i32
    %c0_i32_0 = arith.constant 0 : i32
    %c0_i32_1 = arith.constant 0 : i32
    return %c0_i32, %c0_i32_0 : i32, i32
  }
  func.func @transform_5(%arg0: i32) -> (i32, i32) {
    %c0_i32 = arith.constant 0 : i32
    %c0_i32_0 = arith.constant 0 : i32
    return %arg0, %c0_i32 : i32, i32
  }
}

module attributes {stable_mosaic.version = 11 : i64} {
  func.func @_fused_mlp_kernel(%arg0: i32, %arg1: memref<8x8xf32, #tpu.memory_space<vmem>>, %arg2: memref<8x128xf32, #tpu.memory_space<vmem>>, %arg3: memref<1x128xf32, #tpu.memory_space<vmem>>, %arg4: memref<128x128xf32, #tpu.memory_space<vmem>>, %arg5: memref<128x128xf32, #tpu.memory_space<vmem>>, %arg6: memref<8x128xf32, #tpu.memory_space<vmem>>) attributes {dimension_semantics = [#tpu.dimension_semantics<parallel>], iteration_bounds = array<i64: 1>, scalar_prefetch = 0 : i64, scratch_operands = 0 : i64, tpu.core_type = #tpu.core_type<tc>, window_params = [{transform_indices = @transform_0, window_bounds = array<i64: 8, 8>}, {pipeline_mode = #tpu.pipeline_mode<synchronous>, transform_indices = @transform_1, window_bounds = array<i64: 8, 128>}, {pipeline_mode = #tpu.pipeline_mode<synchronous>, transform_indices = @transform_2, window_bounds = array<i64: 1, 128>}, {pipeline_mode = #tpu.pipeline_mode<synchronous>, transform_indices = @transform_3, window_bounds = array<i64: 128, 128>}, {pipeline_mode = #tpu.pipeline_mode<synchronous>, transform_indices = @transform_4, window_bounds = array<i64: 128, 128>}, {transform_indices = @transform_5, window_bounds = array<i64: 8, 128>}]} {
    %c0 = arith.constant 0 : index
    %c0_0 = arith.constant 0 : index
    %0 = vector.load %arg1[%c0, %c0_0] : memref<8x8xf32, #tpu.memory_space<vmem>>, vector<8x8xf32>
    %c0_1 = arith.constant 0 : index
    %c0_2 = arith.constant 0 : index
    %1 = vector.load %arg2[%c0_1, %c0_2] : memref<8x128xf32, #tpu.memory_space<vmem>>, vector<8x128xf32>
    %cst = arith.constant dense<0.000000e+00> : vector<8x128xf32>
    %2 = tpu.matmul %0, %1, %cst {dimension_numbers = #tpu.dot_dimension_numbers<[1], [0], [0], [1], [0, 0, 1, 1], [], []>} : vector<8x8xf32>, vector<8x128xf32>, vector<8x128xf32> -> vector<8x128xf32>
    %c0_3 = arith.constant 0 : index
    %c0_4 = arith.constant 0 : index
    %3 = vector.load %arg3[%c0_3, %c0_4] : memref<1x128xf32, #tpu.memory_space<vmem>>, vector<1x128xf32>
    %4 = vector.broadcast %3 : vector<1x128xf32> to vector<8x128xf32>
    %5 = arith.addf %2, %4 : vector<8x128xf32>
    %6 = math.tanh %5 : vector<8x128xf32>
    %c0_5 = arith.constant 0 : index
    %c0_6 = arith.constant 0 : index
    %7 = vector.load %arg4[%c0_5, %c0_6] : memref<128x128xf32, #tpu.memory_space<vmem>>, vector<128x128xf32>
    %cst_7 = arith.constant dense<0.000000e+00> : vector<8x128xf32>
    %8 = tpu.matmul %6, %7, %cst_7 {dimension_numbers = #tpu.dot_dimension_numbers<[1], [0], [0], [1], [0, 0, 1, 1], [], []>} : vector<8x128xf32>, vector<128x128xf32>, vector<8x128xf32> -> vector<8x128xf32>
    %9 = math.tanh %8 : vector<8x128xf32>
    %c0_8 = arith.constant 0 : index
    %c0_9 = arith.constant 0 : index
    %10 = vector.load %arg5[%c0_8, %c0_9] : memref<128x128xf32, #tpu.memory_space<vmem>>, vector<128x128xf32>
    %cst_10 = arith.constant dense<0.000000e+00> : vector<8x128xf32>
    %11 = tpu.matmul %9, %10, %cst_10 {dimension_numbers = #tpu.dot_dimension_numbers<[1], [0], [0], [1], [0, 0, 1, 1], [], []>} : vector<8x128xf32>, vector<128x128xf32>, vector<8x128xf32> -> vector<8x128xf32>
    %c0_11 = arith.constant 0 : index
    %c0_12 = arith.constant 0 : index
    %12 = vector.load %arg6[%c0_11, %c0_12] : memref<8x128xf32, #tpu.memory_space<vmem>>, vector<8x128xf32>
    tpu.vector_store %arg6[%c0_11, %c0_12], %11 {strides = array<i32>} : memref<8x128xf32, #tpu.memory_space<vmem>>, vector<8x128xf32>,
    return
  }
  func.func @transform_0(%arg0: i32) -> (i32, i32) {
    %c0_i32 = arith.constant 0 : i32
    %c0_i32_0 = arith.constant 0 : i32
    return %arg0, %c0_i32 : i32, i32
  }
  func.func @transform_1(%arg0: i32) -> (i32, i32) {
    %c0_i32 = arith.constant 0 : i32
    %c0_i32_0 = arith.constant 0 : i32
    %c0_i32_1 = arith.constant 0 : i32
    return %c0_i32, %c0_i32_0 : i32, i32
  }
  func.func @transform_2(%arg0: i32) -> (i32, i32) {
    %c0_i32 = arith.constant 0 : i32
    %c0_i32_0 = arith.constant 0 : i32
    %c0_i32_1 = arith.constant 0 : i32
    return %c0_i32, %c0_i32_0 : i32, i32
  }
  func.func @transform_3(%arg0: i32) -> (i32, i32) {
    %c0_i32 = arith.constant 0 : i32
    %c0_i32_0 = arith.constant 0 : i32
    %c0_i32_1 = arith.constant 0 : i32
    return %c0_i32, %c0_i32_0 : i32, i32
  }
  func.func @transform_4(%arg0: i32) -> (i32, i32) {
    %c0_i32 = arith.constant 0 : i32
    %c0_i32_0 = arith.constant 0 : i32
    %c0_i32_1 = arith.constant 0 : i32
    return %c0_i32, %c0_i32_0 : i32, i32
  }
  func.func @transform_5(%arg0: i32) -> (i32, i32) {
    %c0_i32 = arith.constant 0 : i32
    %c0_i32_0 = arith.constant 0 : i32
    return %arg0, %c0_i32 : i32, i32
  }
}

</mosaic_0001>

<bundles_post_ra>
// kernel: tpu_custom_call.1
= control target key start
LH: loop header
LB: loop body
LE: loop exit
PB: predicated region body
PF: predicated region fallthrough
CT: control target
= control target key end

     0   :  { %10 = vsyncpa [#allocation3], 0  ;;  %s400_s0 = inlined_call_operand.hbm [shape: f32[8,8], index: 0, kind: input, shape index: {}]   ;;  %s401_s1 = inlined_call_operand.hbm [shape: f32[8,128], index: 1, kind: input, shape index: {}]   ;;  %s402_s2 = inlined_call_operand.vmem [shape: f32[1,128], index: 2, kind: input, shape index: {}]   ;;  %s403_s3 = inlined_call_operand.hbm [shape: f32[128,128], index: 3, kind: input, shape index: {}]   ;;  %s404_s4 = inlined_call_operand.hbm [shape: f32[128,128], index: 4, kind: input, shape index: {}]   ;;  %s405_s5 = inlined_call_operand.hbm [shape: f32[8,128], index: 5, kind: output, shape index: {}]  }
   0x1   :  { %11 = vsyncpa [#allocation6], 0 }
   0x2   :  { %12 = vsyncpa [#allocation9], 0  ;;  %s30_s20 = sshll.u32 %s401_s1, 4  ;;  %s31_s20 = int_to_ptr.hbm [resolvable:$true] %s30_s20 }
   0x3   :  { %13 = vsyncpa [#allocation4], 0  ;;  %s345_s21 = smov [#allocation5]   ;;  %s19_s25 = sshll.u32 %s400_s0, 4  ;;  %s20_s25 = int_to_ptr.hbm [resolvable:$true] %s19_s25 }
   0x4   :  { %s32_s22 = sshll.u32 %s345_s21, 4  ;;  %s346_s26 = smov [#allocation2]   ;;  %s33_s22 = int_to_ptr.vmem [resolvable:$true] %s32_s22 }
   0x5   :  { %35 = dma.hbm_to_vmem [thread:$0]  %s31_s20, 128, %s33_s22, [#allocation6]  }
   0x6   :  { %s21_s27 = sshll.u32 %s346_s26, 4  ;;  %s42_s30 = sshll.u32 %s403_s3, 4  ;;  %s22_s27 = int_to_ptr.vmem [resolvable:$true] %s21_s27  ;;  %s43_s30 = int_to_ptr.hbm [resolvable:$true] %s42_s30 }
   0x7   :  { %24 = dma.hbm_to_vmem [thread:$0]  %s20_s25, 128, %s22_s27, [#allocation3]  }
   0x8   :  { %s347_s1 = smov [#allocation7]   ;;  %s55_s9 = sshll.u32 %s404_s4, 4  ;;  %s56_s9 = int_to_ptr.hbm [resolvable:$true] %s55_s9 }
   0x9   :  { %s44_s6 = sshll.u32 %s347_s1, 4  ;;  %s348_s10 = smov 128   ;;  %s45_s6 = int_to_ptr.vmem [resolvable:$true] %s44_s6 }
   0xa   :  { %s349_s0 = smov 8   ;;  %s350_s11 = smov [#allocation8]  }
   0xb   :  { %50 = dma.hbm_to_vmem [thread:$0]  %s43_s30, 2048, %s45_s6, [#allocation6], %s348_s10, %s348_s10, %s349_s0  }
   0xc   :  { %s57_s12 = sshll.u32 %s350_s11, 4  ;;  %s58_s12 = int_to_ptr.vmem [resolvable:$true] %s57_s12 }
   0xd   :  { %63 = dma.hbm_to_vmem [thread:$0]  %s56_s9, 2048, %s58_s12, [#allocation9], %s348_s10, %s348_s10, %s349_s0  }
   0xe   :  { %337 = dma.done.wait [#allocation3], 128  }
   0xf   :  { %338 = vsyncadd [#allocation3], 4294967168 }
  0x10   :  { %339 = dma.done.wait [#allocation6], 2176  }
  0x11   :  { %340 = vsyncadd [#allocation6], 4294965120 }
  0x12   :  { %341 = dma.done.wait [#allocation9], 2048  }
  0x13   :  { %342 = vsyncadd [#allocation9], 4294965248  ;;  %vm86_vm0 = vcmask 64512   ;;  %v81_v0 = vld [vmem:[#allocation5] sm:$0xff]  ;;  %v80_v1 = vld [vmem:[#allocation2] sm:$0xff]  ;;  %s192_s16 = sshll.u32 %s405_s5, 4  ;;  %s193_s16 = int_to_ptr.hbm [resolvable:$true] %s192_s16 }
  0x14   :  { %v126_v2 = vld [vmem:[#allocation7 + $0x78] sm:$0xff]  ;;  %105 = vmatpush.msra.mxu0 %v81_v0  ;;  %v125_v3 = vld [vmem:[#allocation7 + $0x70] sm:$0xff]  ;;  %v124_v4 = vld [vmem:[#allocation7 + $0x68] sm:$0xff] }
  0x15   :  { %127 = vmatpush.msra.mxu1 %v126_v2  ;;  %204 = vmatmul.msk.f32.vlgmr.msra.gmra.mxu0 %vm86_vm0, %v80_v1  ;;  %v123_v5 = vld [vmem:[#allocation7 + $0x60] sm:$0xff]  ;;  %v122_v6 = vld [vmem:[#allocation7 + $0x58] sm:$0xff]  ;;  %v121_v7 = vld [vmem:[#allocation7 + $0x50] sm:$0xff] }
  0x16   :  { %v120_v8 = vld [vmem:[#allocation7 + $0x48] sm:$0xff]  ;;  %v119_v9 = vld [vmem:[#allocation7 + $0x40] sm:$0xff]  ;;  %v118_v10 = vld [vmem:[#allocation7 + $0x38] sm:$0xff] }
  0x17   :  { %128 = vmatpush.msra.mxu1 %v125_v3  ;;  %v117_v11 = vld [vmem:[#allocation7 + $0x30] sm:$0xff]  ;;  %v116_v12 = vld [vmem:[#allocation7 + $0x28] sm:$0xff]  ;;  %v115_v13 = vld [vmem:[#allocation7 + $0x20] sm:$0xff] }
  0x18   :  { %v114_v14 = vld [vmem:[#allocation7 + $0x18] sm:$0xff]  ;;  %v113_v15 = vld [vmem:[#allocation7 + $0x10] sm:$0xff]  ;;  %v112_v16 = vld [vmem:[#allocation7 + $0x8] sm:$0xff] }
  0x19   :  { %129 = vmatpush.msra.mxu1 %v124_v4  ;;  %v111_v17 = vld [vmem:[#allocation7] sm:$0xff]  ;;  %v163_v18 = vld [vmem:[#allocation8 + $0x78] sm:$0xff]  ;;  %v162_v19 = vld [vmem:[#allocation8 + $0x70] sm:$0xff] }
  0x1a   :  { %164 = vmatpush.msra.mxu2 %v163_v18  ;;  %v161_v20 = vld [vmem:[#allocation8 + $0x68] sm:$0xff]  ;;  %v160_v21 = vld [vmem:[#allocation8 + $0x60] sm:$0xff]  ;;  %v159_v22 = vld [vmem:[#allocation8 + $0x58] sm:$0xff] }
  0x1b   :  { %130 = vmatpush.msra.mxu1 %v123_v5  ;;  %v158_v23 = vld [vmem:[#allocation8 + $0x50] sm:$0xff]  ;;  %v157_v24 = vld [vmem:[#allocation8 + $0x48] sm:$0xff]  ;;  %v156_v25 = vld [vmem:[#allocation8 + $0x40] sm:$0xff] }
  0x1c   :  { %165 = vmatpush.msra.mxu2 %v162_v19  ;;  %v155_v26 = vld [vmem:[#allocation8 + $0x38] sm:$0xff]  ;;  %v154_v27 = vld [vmem:[#allocation8 + $0x30] sm:$0xff]  ;;  %v153_v28 = vld [vmem:[#allocation8 + $0x28] sm:$0xff] }
  0x1d   :  { %131 = vmatpush.msra.mxu1 %v122_v6  ;;  %v212_v29 = vld [vmem:[%s402_s2] ss:$0 sm:$0xff]  ;;  %v152_v30 = vld [vmem:[#allocation8 + $0x20] sm:$0xff]  ;;  %v151_v34 = vld [vmem:[#allocation8 + $0x18] sm:$0xff]  ;;  %s351_s2 = smov [#allocation10]  }
  0x1e   :  { %166 = vmatpush.msra.mxu2 %v161_v20  ;;  %v150_v35 = vld [vmem:[#allocation8 + $0x10] sm:$0xff]  ;;  %v149_v36 = vld [vmem:[#allocation8 + $0x8] sm:$0xff]  ;;  %v148_v37 = vld [vmem:[#allocation8] sm:$0xff]  ;;  %s190_s13 = sshll.u32 %s351_s2, 4  ;;  %s191_s13 = int_to_ptr.vmem [resolvable:$true] %s190_s13 }
  0x1f   :  { %132 = vmatpush.msra.mxu1 %v121_v7 }
  0x20   :  { %167 = vmatpush.msra.mxu2 %v160_v21 }
  0x21   :  { %133 = vmatpush.msra.mxu1 %v120_v8 }
  0x22   :  { %168 = vmatpush.msra.mxu2 %v159_v22 }
  0x23   :  { %134 = vmatpush.msra.mxu1 %v119_v9 }
  0x24   :  { %169 = vmatpush.msra.mxu2 %v158_v23 }
  0x25   :  { %135 = vmatpush.msra.mxu1 %v118_v10 }
  0x26   :  { %170 = vmatpush.msra.mxu2 %v157_v24 }
  0x27   :  { %136 = vmatpush.msra.mxu1 %v117_v11 }
  0x28   :  { %171 = vmatpush.msra.mxu2 %v156_v25 }
  0x29   :  { %137 = vmatpush.msra.mxu1 %v116_v12 }
  0x2a   :  { %172 = vmatpush.msra.mxu2 %v155_v26 }
  0x2b   :  { %138 = vmatpush.msra.mxu1 %v115_v13 }
  0x2c   :  { %173 = vmatpush.msra.mxu2 %v154_v27 }
  0x2d   :  { %139 = vmatpush.msra.mxu1 %v114_v14 }
  0x2e   :  { %174 = vmatpush.msra.mxu2 %v153_v28 }
  0x2f   :  { %140 = vmatpush.msra.mxu1 %v113_v15 }
  0x30   :  { %175 = vmatpush.msra.mxu2 %v152_v30 }
  0x31   :  { %141 = vmatpush.msra.mxu1 %v112_v16 }
  0x32   :  { %176 = vmatpush.msra.mxu2 %v151_v34 }
  0x33   :  { %142 = vmatpush.msra.mxu1 %v111_v17 }
  0x34   :  { %177 = vmatpush.msra.mxu2 %v150_v35 }
  0x36   :  { %178 = vmatpush.msra.mxu2 %v149_v36 }
  0x38   :  { %179 = vmatpush.msra.mxu2 %v148_v37 }
  0x92   :  { %v107_v31 = vpop.f32.mrf.mxu0 }
  0x93   :  { %v108_v32 = vadd.f32 %v212_v29, %v107_v31 }
  0x95   :  { %213 = vtanh.f32 %v108_v32 }
  0x9b   :  { %v214_v33 = vpop.eup %213 }
  0x9c   :  { %143 = vmatmul.f32.vlgmr.msra.gmra.mxu1 %v214_v33 }
 0x119   :  { %v144_v38 = vpop.f32.mrf.mxu1 }
 0x11a   :  { %215 = vtanh.f32 %v144_v38 }
 0x120   :  { %v216_v39 = vpop.eup %215 }
 0x121   :  { %180 = vmatmul.f32.vlgmr.msra.gmra.mxu2 %v216_v39 }
 0x1a4   :  { %v181_v40 = vpop.f32.mrf.mxu2 }
 0x1a5   :  { %184 = vst [vmem:[#allocation10] sm:$0xff] %v181_v40 }
 0x1a6   :  { %195 = dma.vmem_to_hbm [thread:$0]  %s191_s13, 128, %s193_s16, [#allocation4]  }
 0x1a7   :  { %343 = dma.done.wait [#allocation4], 128  }
 0x1a8   :  { %344 = vsyncadd [#allocation4], 4294967168 }
 0x1a9   :  { %200 = vsyncpa [#allocation3], 1 }
 0x1aa   :  { %201 = vsyncpa [#allocation6], 1 }
 0x1ab   :  { %202 = vsyncpa [#allocation9], 1 }
 0x1ac   :  { %203 = vsyncpa [#allocation4], 1 }

// kernel: tpu_custom_call.1
= control target key start
LH: loop header
LB: loop body
LE: loop exit
PB: predicated region body
PF: predicated region fallthrough
CT: control target
= control target key end

     0   :  { %10 = vsyncpa [#allocation3], 0  ;;  %s400_s0 = inlined_call_operand.hbm [shape: f32[8,8], index: 0, kind: input, shape index: {}]   ;;  %s401_s1 = inlined_call_operand.hbm [shape: f32[8,128], index: 1, kind: input, shape index: {}]   ;;  %s402_s2 = inlined_call_operand.vmem [shape: f32[1,128], index: 2, kind: input, shape index: {}]   ;;  %s403_s3 = inlined_call_operand.hbm [shape: f32[128,128], index: 3, kind: input, shape index: {}]   ;;  %s404_s4 = inlined_call_operand.hbm [shape: f32[128,128], index: 4, kind: input, shape index: {}]   ;;  %s405_s5 = inlined_call_operand.hbm [shape: f32[8,128], index: 5, kind: output, shape index: {}]  }
   0x1   :  { %11 = vsyncpa [#allocation6], 0 }
   0x2   :  { %12 = vsyncpa [#allocation9], 0  ;;  %s30_s20 = sshll.u32 %s401_s1, 4  ;;  %s31_s20 = int_to_ptr.hbm [resolvable:$true] %s30_s20 }
   0x3   :  { %13 = vsyncpa [#allocation4], 0  ;;  %s345_s21 = smov [#allocation5]   ;;  %s19_s25 = sshll.u32 %s400_s0, 4  ;;  %s20_s25 = int_to_ptr.hbm [resolvable:$true] %s19_s25 }
   0x4   :  { %s32_s22 = sshll.u32 %s345_s21, 4  ;;  %s346_s26 = smov [#allocation2]   ;;  %s33_s22 = int_to_ptr.vmem [resolvable:$true] %s32_s22 }
   0x5   :  { %35 = dma.hbm_to_vmem [thread:$0]  %s31_s20, 128, %s33_s22, [#allocation6]  }
   0x6   :  { %s21_s27 = sshll.u32 %s346_s26, 4  ;;  %s42_s30 = sshll.u32 %s403_s3, 4  ;;  %s22_s27 = int_to_ptr.vmem [resolvable:$true] %s21_s27  ;;  %s43_s30 = int_to_ptr.hbm [resolvable:$true] %s42_s30 }
   0x7   :  { %24 = dma.hbm_to_vmem [thread:$0]  %s20_s25, 128, %s22_s27, [#allocation3]  }
   0x8   :  { %s347_s1 = smov [#allocation7]   ;;  %s55_s9 = sshll.u32 %s404_s4, 4  ;;  %s56_s9 = int_to_ptr.hbm [resolvable:$true] %s55_s9 }
   0x9   :  { %s44_s6 = sshll.u32 %s347_s1, 4  ;;  %s348_s10 = smov 128   ;;  %s45_s6 = int_to_ptr.vmem [resolvable:$true] %s44_s6 }
   0xa   :  { %s349_s0 = smov 8   ;;  %s350_s11 = smov [#allocation8]  }
   0xb   :  { %50 = dma.hbm_to_vmem [thread:$0]  %s43_s30, 2048, %s45_s6, [#allocation6], %s348_s10, %s348_s10, %s349_s0  }
   0xc   :  { %s57_s12 = sshll.u32 %s350_s11, 4  ;;  %s58_s12 = int_to_ptr.vmem [resolvable:$true] %s57_s12 }
   0xd   :  { %63 = dma.hbm_to_vmem [thread:$0]  %s56_s9, 2048, %s58_s12, [#allocation9], %s348_s10, %s348_s10, %s349_s0  }
   0xe   :  { %337 = dma.done.wait [#allocation3], 128  }
   0xf   :  { %338 = vsyncadd [#allocation3], 4294967168 }
  0x10   :  { %339 = dma.done.wait [#allocation6], 2176  }
  0x11   :  { %340 = vsyncadd [#allocation6], 4294965120 }
  0x12   :  { %341 = dma.done.wait [#allocation9], 2048  }
  0x13   :  { %342 = vsyncadd [#allocation9], 4294965248  ;;  %vm86_vm0 = vcmask 64512   ;;  %v81_v0 = vld [vmem:[#allocation5] sm:$0xff]  ;;  %v80_v1 = vld [vmem:[#allocation2] sm:$0xff]  ;;  %s192_s16 = sshll.u32 %s405_s5, 4  ;;  %s193_s16 = int_to_ptr.hbm [resolvable:$true] %s192_s16 }
  0x14   :  { %v126_v2 = vld [vmem:[#allocation7 + $0x78] sm:$0xff]  ;;  %105 = vmatpush.msra.mxu0 %v81_v0  ;;  %v125_v3 = vld [vmem:[#allocation7 + $0x70] sm:$0xff]  ;;  %v124_v4 = vld [vmem:[#allocation7 + $0x68] sm:$0xff] }
  0x15   :  { %127 = vmatpush.msra.mxu1 %v126_v2  ;;  %204 = vmatmul.msk.f32.vlgmr.msra.gmra.mxu0 %vm86_vm0, %v80_v1  ;;  %v123_v5 = vld [vmem:[#allocation7 + $0x60] sm:$0xff]  ;;  %v122_v6 = vld [vmem:[#allocation7 + $0x58] sm:$0xff]  ;;  %v121_v7 = vld [vmem:[#allocation7 + $0x50] sm:$0xff] }
  0x16   :  { %v120_v8 = vld [vmem:[#allocation7 + $0x48] sm:$0xff]  ;;  %v119_v9 = vld [vmem:[#allocation7 + $0x40] sm:$0xff]  ;;  %v118_v10 = vld [vmem:[#allocation7 + $0x38] sm:$0xff] }
  0x17   :  { %128 = vmatpush.msra.mxu1 %v125_v3  ;;  %v117_v11 = vld [vmem:[#allocation7 + $0x30] sm:$0xff]  ;;  %v116_v12 = vld [vmem:[#allocation7 + $0x28] sm:$0xff]  ;;  %v115_v13 = vld [vmem:[#allocation7 + $0x20] sm:$0xff] }
  0x18   :  { %v114_v14 = vld [vmem:[#allocation7 + $0x18] sm:$0xff]  ;;  %v113_v15 = vld [vmem:[#allocation7 + $0x10] sm:$0xff]  ;;  %v112_v16 = vld [vmem:[#allocation7 + $0x8] sm:$0xff] }
  0x19   :  { %129 = vmatpush.msra.mxu1 %v124_v4  ;;  %v111_v17 = vld [vmem:[#allocation7] sm:$0xff]  ;;  %v163_v18 = vld [vmem:[#allocation8 + $0x78] sm:$0xff]  ;;  %v162_v19 = vld [vmem:[#allocation8 + $0x70] sm:$0xff] }
  0x1a   :  { %164 = vmatpush.msra.mxu2 %v163_v18  ;;  %v161_v20 = vld [vmem:[#allocation8 + $0x68] sm:$0xff]  ;;  %v160_v21 = vld [vmem:[#allocation8 + $0x60] sm:$0xff]  ;;  %v159_v22 = vld [vmem:[#allocation8 + $0x58] sm:$0xff] }
  0x1b   :  { %130 = vmatpush.msra.mxu1 %v123_v5  ;;  %v158_v23 = vld [vmem:[#allocation8 + $0x50] sm:$0xff]  ;;  %v157_v24 = vld [vmem:[#allocation8 + $0x48] sm:$0xff]  ;;  %v156_v25 = vld [vmem:[#allocation8 + $0x40] sm:$0xff] }
  0x1c   :  { %165 = vmatpush.msra.mxu2 %v162_v19  ;;  %v155_v26 = vld [vmem:[#allocation8 + $0x38] sm:$0xff]  ;;  %v154_v27 = vld [vmem:[#allocation8 + $0x30] sm:$0xff]  ;;  %v153_v28 = vld [vmem:[#allocation8 + $0x28] sm:$0xff] }
  0x1d   :  { %131 = vmatpush.msra.mxu1 %v122_v6  ;;  %v212_v29 = vld [vmem:[%s402_s2] ss:$0 sm:$0xff]  ;;  %v152_v30 = vld [vmem:[#allocation8 + $0x20] sm:$0xff]  ;;  %v151_v34 = vld [vmem:[#allocation8 + $0x18] sm:$0xff]  ;;  %s351_s2 = smov [#allocation10]  }
  0x1e   :  { %166 = vmatpush.msra.mxu2 %v161_v20  ;;  %v150_v35 = vld [vmem:[#allocation8 + $0x10] sm:$0xff]  ;;  %v149_v36 = vld [vmem:[#allocation8 + $0x8] sm:$0xff]  ;;  %v148_v37 = vld [vmem:[#allocation8] sm:$0xff]  ;;  %s190_s13 = sshll.u32 %s351_s2, 4  ;;  %s191_s13 = int_to_ptr.vmem [resolvable:$true] %s190_s13 }
  0x1f   :  { %132 = vmatpush.msra.mxu1 %v121_v7 }
  0x20   :  { %167 = vmatpush.msra.mxu2 %v160_v21 }
  0x21   :  { %133 = vmatpush.msra.mxu1 %v120_v8 }
  0x22   :  { %168 = vmatpush.msra.mxu2 %v159_v22 }
  0x23   :  { %134 = vmatpush.msra.mxu1 %v119_v9 }
  0x24   :  { %169 = vmatpush.msra.mxu2 %v158_v23 }
  0x25   :  { %135 = vmatpush.msra.mxu1 %v118_v10 }
  0x26   :  { %170 = vmatpush.msra.mxu2 %v157_v24 }
  0x27   :  { %136 = vmatpush.msra.mxu1 %v117_v11 }
  0x28   :  { %171 = vmatpush.msra.mxu2 %v156_v25 }
  0x29   :  { %137 = vmatpush.msra.mxu1 %v116_v12 }
  0x2a   :  { %172 = vmatpush.msra.mxu2 %v155_v26 }
  0x2b   :  { %138 = vmatpush.msra.mxu1 %v115_v13 }
  0x2c   :  { %173 = vmatpush.msra.mxu2 %v154_v27 }
  0x2d   :  { %139 = vmatpush.msra.mxu1 %v114_v14 }
  0x2e   :  { %174 = vmatpush.msra.mxu2 %v153_v28 }
  0x2f   :  { %140 = vmatpush.msra.mxu1 %v113_v15 }
  0x30   :  { %175 = vmatpush.msra.mxu2 %v152_v30 }
  0x31   :  { %141 = vmatpush.msra.mxu1 %v112_v16 }
  0x32   :  { %176 = vmatpush.msra.mxu2 %v151_v34 }
  0x33   :  { %142 = vmatpush.msra.mxu1 %v111_v17 }
  0x34   :  { %177 = vmatpush.msra.mxu2 %v150_v35 }
  0x36   :  { %178 = vmatpush.msra.mxu2 %v149_v36 }
  0x38   :  { %179 = vmatpush.msra.mxu2 %v148_v37 }
  0x92   :  { %v107_v31 = vpop.f32.mrf.mxu0 }
  0x93   :  { %v108_v32 = vadd.f32 %v212_v29, %v107_v31 }
  0x95   :  { %213 = vtanh.f32 %v108_v32 }
  0x9b   :  { %v214_v33 = vpop.eup %213 }
  0x9c   :  { %143 = vmatmul.f32.vlgmr.msra.gmra.mxu1 %v214_v33 }
 0x119   :  { %v144_v38 = vpop.f32.mrf.mxu1 }
 0x11a   :  { %215 = vtanh.f32 %v144_v38 }
 0x120   :  { %v216_v39 = vpop.eup %215 }
 0x121   :  { %180 = vmatmul.f32.vlgmr.msra.gmra.mxu2 %v216_v39 }
 0x1a4   :  { %v181_v40 = vpop.f32.mrf.mxu2 }
 0x1a5   :  { %184 = vst [vmem:[#allocation10] sm:$0xff] %v181_v40 }
 0x1a6   :  { %195 = dma.vmem_to_hbm [thread:$0]  %s191_s13, 128, %s193_s16, [#allocation4]  }
 0x1a7   :  { %343 = dma.done.wait [#allocation4], 128  }
 0x1a8   :  { %344 = vsyncadd [#allocation4], 4294967168 }
 0x1a9   :  { %200 = vsyncpa [#allocation3], 1 }
 0x1aa   :  { %201 = vsyncpa [#allocation6], 1 }
 0x1ab   :  { %202 = vsyncpa [#allocation9], 1 }
 0x1ac   :  { %203 = vsyncpa [#allocation4], 1 }

</bundles_post_ra>
